<compile_context>
chip_gen: v5e
topology: v5e:2x2
jax: 0.10.0
libtpu: 0.0.40
codegen_flags: <defaults>
</compile_context>

<pallas_src>
import functools

import jax
import jax.numpy as jnp
from jax.experimental import pallas as pl
from jax.experimental.pallas import tpu as pltpu


def mlp_kernel(x_ref, w1_ref, b1_ref, w2_ref, b2_ref, o_ref):
    # x:  (4, TB)      w1: (128, 4)   b1: (128, 1)
    # w2: (1, 128)     b2: (1,) scalar in SMEM
    # o:  (1, TB)  -> lane-dense output
    x = x_ref[...]
    # First linear (transposed): (128,4) @ (4,TB) -> (128,TB), f32 accumulation.
    h = jnp.dot(w1_ref[...], x, preferred_element_type=jnp.float32) + b1_ref[...]
    h = jnp.maximum(h, 0.0)  # ReLU on VPU, f32 (safe on v5e too)
    # Second linear (transposed): (1,128) @ (128,TB) -> (1,TB), lane-dense.
    y = jnp.dot(w2_ref[...], h, preferred_element_type=jnp.float32) + b2_ref[0]
    o_ref[...] = y.astype(o_ref.dtype)


@functools.partial(jax.jit, static_argnames=("tb",))
def mlp_forward(x, w1, b1, w2, b2, *, tb=128):
    """x: (B, 4).  Params in PyTorch layout: w1 (128,4), b1 (128,), w2 (1,128), b2 (1,).

    tb is the batch tile (lane) width; 128 is fine for small demos — raise it
    (e.g. 1024-8192) for large B; tiles stay tiny relative to VMEM even on v7x.
    """
    B = x.shape[0]
    hid = w1.shape[0]           # 128
    n_blocks = pl.cdiv(B, tb)
    b_pad = n_blocks * tb

    # Batch-as-lanes layout, zero-padded to a multiple of the tile width.
    x_t = jnp.zeros((x.shape[1], b_pad), jnp.float32).at[:, :B].set(x.T)
    b1_col = b1.reshape(hid, 1).astype(jnp.float32)
    b2_s = b2.reshape(1).astype(jnp.float32)

    out_t = pl.pallas_call(
        mlp_kernel,
        out_shape=jax.ShapeDtypeStruct((1, b_pad), jnp.float32),
        grid=(n_blocks,),
        in_specs=[
            # x tile, streamed (double-buffered) over the batch grid axis.
            pl.BlockSpec((x.shape[1], tb), lambda i: (0, i)),
            # Weights / bias: same block every step -> VMEM-resident.
            pl.BlockSpec((hid, x.shape[1]), lambda i: (0, 0)),
            pl.BlockSpec((hid, 1), lambda i: (0, 0)),
            pl.BlockSpec((1, hid), lambda i: (0, 0)),
            # Scalar b2 in SMEM (no padded VMEM tile for a single float).
            pl.BlockSpec(memory_space=pltpu.MemorySpace.SMEM),
        ],
        out_specs=pl.BlockSpec((1, tb), lambda i: (0, i)),
        compiler_params=pltpu.CompilerParams(
            dimension_semantics=("parallel",),  # batch tiles are independent
        ),
    )(x_t, w1.astype(jnp.float32), b1_col, w2.astype(jnp.float32), b2_s)

    # Back to PyTorch convention: (B, 1); drop padded batch columns.
    return out_t[:, :B].T


def init_params(key):
    # PyTorch nn.Linear default init: U(-1/sqrt(fan_in), +1/sqrt(fan_in)),
    # weights stored in PyTorch (out_features, in_features) layout.
    k1, k2, k3, k4 = jax.random.split(key, 4)
    in1, hid, out = 4, 128, 1
    bound1 = 1.0 / (in1 ** 0.5)
    bound2 = 1.0 / (hid ** 0.5)
    w1 = jax.random.uniform(k1, (hid, in1), jnp.float32, -bound1, bound1)   # (128, 4)
    b1 = jax.random.uniform(k2, (hid,), jnp.float32, -bound1, bound1)       # (128,)
    w2 = jax.random.uniform(k3, (out, hid), jnp.float32, -bound2, bound2)   # (1, 128)
    b2 = jax.random.uniform(k4, (out,), jnp.float32, -bound2, bound2)       # (1,)
    return w1, b1, w2, b2


if __name__ == "__main__":
    key = jax.random.PRNGKey(0)
    key_x, key_p = jax.random.split(key)

    # Not a multiple of the 128-wide batch tile on purpose: exercises the
    # padding path and gives a 2-step "parallel" grid.
    batch = 200
    x = jax.random.normal(key_x, (batch, 4), dtype=jnp.float32)
    w1, b1, w2, b2 = init_params(key_p)

    out = jax.block_until_ready(mlp_forward(x, w1, b1, w2, b2))

    # Pure-JAX reference (same math, PyTorch layout).
    ref = jnp.maximum(x @ w1.T + b1[None, :], 0.0) @ w2.T + b2[None, :]
    assert out.shape == (batch, 1)
    assert jnp.allclose(out, ref, atol=1e-5, rtol=1e-5)

    print("KERNEL_OK")
</pallas_src>

<mosaic_0001>
module attributes {stable_mosaic.version = 11 : i64} {
  func.func @mlp_kernel(%arg0: i32, %arg1: memref<4x128xf32, #tpu.memory_space<vmem>>, %arg2: memref<128x4xf32, #tpu.memory_space<vmem>>, %arg3: memref<128x1xf32, #tpu.memory_space<vmem>>, %arg4: memref<1x128xf32, #tpu.memory_space<vmem>>, %arg5: memref<1xf32, #tpu.memory_space<smem>>, %arg6: memref<1x128xf32, #tpu.memory_space<vmem>>) attributes {dimension_semantics = [#tpu.dimension_semantics<parallel>], iteration_bounds = array<i64: 2>, scalar_prefetch = 0 : i64, scratch_operands = 0 : i64, tpu.core_type = #tpu.core_type<tc>, window_params = [{transform_indices = @transform_0, window_bounds = array<i64: 4, 128>}, {pipeline_mode = #tpu.pipeline_mode<synchronous>, transform_indices = @transform_1, window_bounds = array<i64: 128, 4>}, {pipeline_mode = #tpu.pipeline_mode<synchronous>, transform_indices = @transform_2, window_bounds = array<i64: 128, 1>}, {pipeline_mode = #tpu.pipeline_mode<synchronous>, transform_indices = @transform_3, window_bounds = array<i64: 1, 128>}, {transform_indices = @transform_4, window_bounds = array<i64: 1>}, {transform_indices = @transform_5, window_bounds = array<i64: 1, 128>}]} {
    %c0 = arith.constant 0 : index
    %c0_0 = arith.constant 0 : index
    %0 = vector.load %arg1[%c0, %c0_0] : memref<4x128xf32, #tpu.memory_space<vmem>>, vector<4x128xf32>
    %c0_1 = arith.constant 0 : index
    %c0_2 = arith.constant 0 : index
    %1 = vector.load %arg2[%c0_1, %c0_2] : memref<128x4xf32, #tpu.memory_space<vmem>>, vector<128x4xf32>
    %cst = arith.constant dense<0.000000e+00> : vector<128x128xf32>
    %2 = tpu.matmul %1, %0, %cst {dimension_numbers = #tpu.dot_dimension_numbers<[1], [0], [0], [1], [0, 0, 1, 1], [], []>} : vector<128x4xf32>, vector<4x128xf32>, vector<128x128xf32> -> vector<128x128xf32>
    %c0_3 = arith.constant 0 : index
    %c0_4 = arith.constant 0 : index
    %3 = vector.load %arg3[%c0_3, %c0_4] : memref<128x1xf32, #tpu.memory_space<vmem>>, vector<128x1xf32>
    %4 = vector.broadcast %3 : vector<128x1xf32> to vector<128x128xf32>
    %5 = arith.addf %2, %4 : vector<128x128xf32>
    %cst_5 = arith.constant 0.000000e+00 : f32
    %6 = vector.broadcast %cst_5 : f32 to vector<128x128xf32>
    %7 = arith.maximumf %5, %6 : vector<128x128xf32>
    %c0_6 = arith.constant 0 : index
    %c0_7 = arith.constant 0 : index
    %8 = vector.load %arg4[%c0_6, %c0_7] : memref<1x128xf32, #tpu.memory_space<vmem>>, vector<1x128xf32>
    %cst_8 = arith.constant dense<0.000000e+00> : vector<1x128xf32>
    %9 = tpu.matmul %8, %7, %cst_8 {dimension_numbers = #tpu.dot_dimension_numbers<[1], [0], [0], [1], [0, 0, 1, 1], [], []>} : vector<1x128xf32>, vector<128x128xf32>, vector<1x128xf32> -> vector<1x128xf32>
    %c0_9 = arith.constant 0 : index
    %10 = memref.load %arg5[%c0_9] : memref<1xf32, #tpu.memory_space<smem>>
    %11 = vector.broadcast %10 : f32 to vector<1x128xf32>
    %12 = arith.addf %9, %11 : vector<1x128xf32>
    %c0_10 = arith.constant 0 : index
    %c0_11 = arith.constant 0 : index
    %13 = vector.load %arg6[%c0_10, %c0_11] : memref<1x128xf32, #tpu.memory_space<vmem>>, vector<1x128xf32>
    tpu.vector_store %arg6[%c0_10, %c0_11], %12 {strides = array<i32>} : memref<1x128xf32, #tpu.memory_space<vmem>>, vector<1x128xf32>,
    return
  }
  func.func @transform_0(%arg0: i32) -> (i32, i32) {
    %c0_i32 = arith.constant 0 : i32
    %c0_i32_0 = arith.constant 0 : i32
    return %c0_i32, %arg0 : i32, i32
  }
  func.func @transform_1(%arg0: i32) -> (i32, i32) {
    %c0_i32 = arith.constant 0 : i32
    %c0_i32_0 = arith.constant 0 : i32
    %c0_i32_1 = arith.constant 0 : i32
    return %c0_i32, %c0_i32_0 : i32, i32
  }
  func.func @transform_2(%arg0: i32) -> (i32, i32) {
    %c0_i32 = arith.constant 0 : i32
    %c0_i32_0 = arith.constant 0 : i32
    %c0_i32_1 = arith.constant 0 : i32
    return %c0_i32, %c0_i32_0 : i32, i32
  }
  func.func @transform_3(%arg0: i32) -> (i32, i32) {
    %c0_i32 = arith.constant 0 : i32
    %c0_i32_0 = arith.constant 0 : i32
    %c0_i32_1 = arith.constant 0 : i32
    return %c0_i32, %c0_i32_0 : i32, i32
  }
  func.func @transform_4(%arg0: i32) -> i32 {
    %c0_i32 = arith.constant 0 : i32
    %c0_i32_0 = arith.constant 0 : i32
    return %c0_i32 : i32
  }
  func.func @transform_5(%arg0: i32) -> (i32, i32) {
    %c0_i32 = arith.constant 0 : i32
    %c0_i32_0 = arith.constant 0 : i32
    return %c0_i32, %arg0 : i32, i32
  }
}

</mosaic_0001>

<bundles_post_ra>
// kernel: mlp_forward.1
= control target key start
LH: loop header
LB: loop body
LE: loop exit
PB: predicated region body
PF: predicated region fallthrough
CT: control target
= control target key end

     0   :  { %s618_s20 = smov 0   ;;  %s760_s0 = inlined_call_operand.vmem [shape: f32[4,256], index: 0, kind: input, shape index: {}]   ;;  %s761_s1 = inlined_call_operand.vmem [shape: f32[128,4], index: 1, kind: input, shape index: {}]   ;;  %s762_s2 = inlined_call_operand.vmem [shape: f32[128,1], index: 2, kind: input, shape index: {}]   ;;  %s763_s3 = inlined_call_operand.vmem [shape: f32[1,128], index: 3, kind: input, shape index: {}]   ;;  %s764_s4 = inlined_call_operand.<no memory space> [shape: f32[1], index: 4, kind: input, shape index: {}]   ;;  %s765_s5 = inlined_call_operand.vmem [shape: f32[1,256], index: 5, kind: output, shape index: {}]  }
   0x1   :  { %10 = sst [smem:[#allocation2]] %s764_s4 }
   0x2 LB: > { %s537_s21 = sadd.s32 4294967295, %s582_s20   ;;  %p541_p0 = scmp.ge.s32.totalorder %s582_s20, 1  ;;  %s582_s20 = sphi %s618_s20, %s16_s20  }
   0x3   : > { %p187_p1 = scmp.lt.s32.totalorder %s582_s20, 3 }
   0x5   : > { %p188_p2 = pnand %p541_p0, %p187_p1 }
   0x6   : > { %p212_p3 = scmp.lt.s32.totalorder (!%p188_p2), %s537_s21, 1  ;;  %s467_s18 = sld [smem:[#allocation2]] (!%p188_p2) }
   0x7   : > { %191 = sbr.rel (%p188_p2) target bundleno = 346 (0x15a), region = 40 }
   0xc   : > { %v251_v0 = vld [vmem:[%s762_s2 + $0x78] sm:$0xff]  ;;  %v584_v1 = vmov 0   ;;  %s767_s21 = smov (!%p212_p3, %s537_s21), 1  ;;  %v249_v2 = vld [vmem:[%s762_s2 + $0x68] sm:$0xff]  ;;  %vm381_vm0 = vcmask 1043456   ;;  %v220_v3 = vld [vmem:[%s761_s1] sm:$0xff] }
   0xd   : > { %573 = vset.pattern.permute.xlu0 %v584_v1  ;;  %574 = vset.pattern.permute.xlu1 %v584_v1  ;;  %s542_s25 = sshll.u32 %s767_s21, 2  ;;  %vm332_vm1 = vcmask 31744   ;;  %v226_v5 = vld [vmem:[%s761_s1 + $0x30] sm:$0xff]  ;;  %v232_v6 = vld [vmem:[%s761_s1 + $0x60] sm:$0xff]  ;;  %v247_v8 = vld [vmem:[%s762_s2 + $0x58] sm:$0xff]  ;;  %s218_s23 = scalar_lea.vmem %s765_s5, %s767_s21 }
   0xe   : > { %329 = vperm.xlu0 %573, %v251_v0   ;;  %575 = vset.pattern.permute.xlu2 %v584_v1  ;;  %s215_s28 = scalar_lea.vmem %s760_s0, %s542_s25  ;;  %v250_v7 = vld [vmem:[%s762_s2 + $0x70] sm:$0xff]  ;;  %v248_v9 = vld [vmem:[%s762_s2 + $0x60] sm:$0xff]  ;;  %v221_v10 = vld [vmem:[%s761_s1 + $0x8] sm:$0xff] }
   0xf   : > { %319 = vperm.xlu1 %574, %v249_v2   ;;  %v219_v4 = vld [vmem:[%s215_s28] sm:$0xf]  ;;  %309 = vperm.xlu2 %575, %v247_v8   ;;  %v227_v11 = vld [vmem:[%s761_s1 + $0x38] sm:$0xff]  ;;  %v233_v12 = vld [vmem:[%s761_s1 + $0x68] sm:$0xff] }
  0x10   : > { %543 = vmatpush.msk.msra.mxu0 %vm381_vm0, %v219_v4  ;;  %562 = vmatpush.msk.msra.mxu2 %vm381_vm0, %v219_v4  ;;  %v245_v13 = vld [vmem:[%s762_s2 + $0x48] sm:$0xff]  ;;  %v246_v14 = vld [vmem:[%s762_s2 + $0x50] sm:$0xff]  ;;  %v244_v15 = vld [vmem:[%s762_s2 + $0x40] sm:$0xff] }
  0x11   : > { %563 = vmatpush.msk.msra.mxu3 %vm381_vm0, %v219_v4  ;;  %544 = vmatmul.msk.f32.vlgmr.msra.gmra.mxu0 %vm332_vm1, %v220_v3  ;;  %v222_v16 = vld [vmem:[%s761_s1 + $0x10] sm:$0xff]  ;;  %v228_v17 = vld [vmem:[%s761_s1 + $0x40] sm:$0xff]  ;;  %v243_v20 = vld [vmem:[%s762_s2 + $0x38] sm:$0xff] }
  0x12   : > { %550 = vmatmul.msk.f32.vlgmr.msra.gmra.mxu2 %vm332_vm1, %v226_v5  ;;  %556 = vmatmul.msk.f32.vlgmr.msra.gmra.mxu3 %vm332_vm1, %v232_v6  ;;  %v234_v18 = vld [vmem:[%s761_s1 + $0x70] sm:$0xff]  ;;  %v241_v21 = vld [vmem:[%s762_s2 + $0x28] sm:$0xff]  ;;  %v223_v22 = vld [vmem:[%s761_s1 + $0x18] sm:$0xff] }
  0x13   : > { %v242_v19 = vld [vmem:[%s762_s2 + $0x30] sm:$0xff]  ;;  %v229_v23 = vld [vmem:[%s761_s1 + $0x48] sm:$0xff]  ;;  %v235_v24 = vld [vmem:[%s761_s1 + $0x78] sm:$0xff] }
  0x14   : > { %v239_v25 = vld [vmem:[%s762_s2 + $0x18] sm:$0xff]  ;;  %v240_v26 = vld [vmem:[%s762_s2 + $0x20] sm:$0xff]  ;;  %v238_v27 = vld [vmem:[%s762_s2 + $0x10] sm:$0xff] }
  0x15   : > { %v224_v28 = vld [vmem:[%s761_s1 + $0x20] sm:$0xff]  ;;  %v230_v29 = vld [vmem:[%s761_s1 + $0x50] sm:$0xff]  ;;  %v237_v31 = vld [vmem:[%s762_s2 + $0x8] sm:$0xff] }
  0x16   : > { %324 = vperm.xlu0 %573, %v250_v7   ;;  %v236_v30 = vld [vmem:[%s762_s2] sm:$0xff]  ;;  %v225_v32 = vld [vmem:[%s761_s1 + $0x28] sm:$0xff]  ;;  %v231_v33 = vld [vmem:[%s761_s1 + $0x58] sm:$0xff] }
  0x17   : > { %314 = vperm.xlu1 %574, %v248_v9   ;;  %304 = vperm.xlu2 %575, %v246_v14  }
  0x19   : > { %545 = vmatmul.msk.f32.gmra.mxu0 %vm332_vm1, %v221_v10 }
  0x1a   : > { %551 = vmatmul.msk.f32.gmra.mxu2 %vm332_vm1, %v227_v11  ;;  %557 = vmatmul.msk.f32.gmra.mxu3 %vm332_vm1, %v233_v12 }
  0x1e   : > { %299 = vperm.xlu0 %573, %v245_v13  }
  0x1f   : > { %294 = vperm.xlu1 %574, %v244_v15   ;;  %289 = vperm.xlu2 %575, %v243_v20  }
  0x21   : > { %546 = vmatmul.msk.f32.gmra.mxu0 %vm332_vm1, %v222_v16 }
  0x22   : > { %552 = vmatmul.msk.f32.gmra.mxu2 %vm332_vm1, %v228_v17  ;;  %558 = vmatmul.msk.f32.gmra.mxu3 %vm332_vm1, %v234_v18 }
  0x26   : > { %284 = vperm.xlu0 %573, %v242_v19  }
  0x27   : > { %279 = vperm.xlu1 %574, %v241_v21   ;;  %274 = vperm.xlu2 %575, %v240_v26  }
  0x29   : > { %547 = vmatmul.msk.f32.gmra.mxu0 %vm332_vm1, %v223_v22 }
  0x2a   : > { %553 = vmatmul.msk.f32.gmra.mxu2 %vm332_vm1, %v229_v23  ;;  %559 = vmatmul.msk.f32.gmra.mxu3 %vm332_vm1, %v235_v24 }
  0x2e   : > { %269 = vperm.xlu0 %573, %v239_v25  }
  0x2f   : > { %264 = vperm.xlu1 %574, %v238_v27   ;;  %259 = vperm.xlu2 %575, %v237_v31  }
  0x31   : > { %548 = vmatmul.msk.f32.gmra.mxu0 %vm332_vm1, %v224_v28 }
  0x32   : > { %554 = vmatmul.msk.f32.gmra.mxu2 %vm332_vm1, %v230_v29 }
  0x36   : > { %254 = vperm.xlu0 %573, %v236_v30  }
  0x39   : > { %549 = vmatmul.msk.f32.gmra.mxu0 %vm332_vm1, %v225_v32 }
  0x3a   : > { %555 = vmatmul.msk.f32.gmra.mxu2 %vm332_vm1, %v231_v33 }
  0x69   : > { %v310_v42 = vpop.permute.xlu2 %309 }
  0x71   : > { %v305_v52 = vpop.permute.xlu2 %304 }
  0x79   : > { %v290_v63 = vpop.permute.xlu2 %289 }
  0x80   : > { %v330_v37 = vpop.permute.xlu0 %329 }
  0x81   : > { %v320_v41 = vpop.permute.xlu1 %319  ;;  %v275_v10 = vpop.permute.xlu2 %274 }
  0x88   : > { %v325_v45 = vpop.permute.xlu0 %324 }
  0x89   : > { %v315_v47 = vpop.permute.xlu1 %314  ;;  %v260_v24 = vpop.permute.xlu2 %259 }
  0x8e   : > { %v744_v34 = vpop.f32.mrf.mxu0 }
  0x90   : > { %v300_v55 = vpop.permute.xlu0 %299 }
  0x91   : > { %v295_v62 = vpop.permute.xlu1 %294 }
  0x95   : > { %v420_v35 = vpop.f32.mrf.mxu2  ;;  %v438_v36 = vpop.f32.mrf.mxu3 }
  0x96   : > { %v746_v38 = vpop.f32.mrf.mxu0  ;;  %v439_v57 = vadd.f32 %v438_v36, %v315_v47  ;;  %v468_v36 = vstv %s467_s18 }
  0x97   : > { %v406_v29 = vadd.f32 %v746_v38, %v260_v24 }
  0x98   : > { %v462_v61 = vmax.f32 %v439_v57, 0.0  ;;  %v285_v0 = vpop.permute.xlu0 %284 }
  0x99   : > { %v280_v7 = vpop.permute.xlu1 %279  ;;  %v421_v15 = vadd.f32 %v420_v35, %v285_v0  ;;  %v451_v32 = vmax.f32 %v406_v29, 0.0  ;;  %v466_v35 = vld [vmem:[%s763_s3] sm:$0x1] }
  0x9b   : > { %v456_v19 = vmax.f32 %v421_v15, 0.0 }
  0x9d   : > { %v423_v39 = vpop.f32.mrf.mxu2  ;;  %v441_v40 = vpop.f32.mrf.mxu3 }
  0x9e   : > { %v408_v46 = vpop.f32.mrf.mxu0  ;;  %v442_v53 = vadd.f32 %v441_v40, %v320_v41  ;;  %v424_v11 = vadd.f32 %v423_v39, %v290_v63 }
  0xa0   : > { %v463_v59 = vmax.f32 %v442_v53, 0.0  ;;  %v270_v13 = vpop.permute.xlu0 %269  ;;  %v457_v17 = vmax.f32 %v424_v11, 0.0 }
  0xa1   : > { %v265_v21 = vpop.permute.xlu1 %264 }
  0xa2   : > { %v409_v25 = vadd.f32 %v408_v46, %v265_v21 }
  0xa4   : > { %v452_v31 = vmax.f32 %v409_v25, 0.0 }
  0xa5   : > { %v426_v43 = vpop.f32.mrf.mxu2  ;;  %v444_v44 = vpop.f32.mrf.mxu3 }
  0xa6   : > { %v445_v50 = vadd.f32 %v444_v44, %v325_v45  ;;  %v411_v56 = vpop.f32.mrf.mxu0  ;;  %v427_v8 = vadd.f32 %v426_v43, %v295_v62 }
  0xa7   : > { %v412_v22 = vadd.f32 %v411_v56, %v270_v13 }
  0xa8   : > { %v464_v58 = vmax.f32 %v445_v50, 0.0  ;;  %v458_v16 = vmax.f32 %v427_v8, 0.0  ;;  %v255_v27 = vpop.permute.xlu0 %254 }
  0xa9   : > { %v453_v28 = vmax.f32 %v412_v22, 0.0  ;;  %v403_v30 = vadd.f32 %v744_v34, %v255_v27 }
  0xab   : > { %v450_v33 = vmax.f32 %v403_v30, 0.0 }
  0xad   : > { %v429_v48 = vpop.f32.mrf.mxu2  ;;  %v447_v49 = vpop.f32.mrf.mxu3 }
  0xae   : > { %v448_v51 = vadd.f32 %v447_v49, %v330_v37  ;;  %v414_v1 = vpop.f32.mrf.mxu0  ;;  %v430_v5 = vadd.f32 %v429_v48, %v300_v55 }
  0xaf   : > { %v415_v20 = vadd.f32 %v414_v1, %v275_v10 }
  0xb0   : > { %v465_v54 = vmax.f32 %v448_v51, 0.0  ;;  %v459_v12 = vmax.f32 %v430_v5, 0.0 }
  0xb1   : > { %v454_v26 = vmax.f32 %v415_v20, 0.0 }
  0xb2   : > { %469 = vmatpush.msra.mxu1 %v465_v54 }
  0xb4   : > { %470 = vmatpush.msra.mxu1 %v464_v58 }
  0xb5   : > { %v432_v60 = vpop.f32.mrf.mxu2 }
  0xb6   : > { %471 = vmatpush.msra.mxu1 %v463_v59  ;;  %v433_v3 = vadd.f32 %v432_v60, %v305_v52  ;;  %v417_v14 = vpop.f32.mrf.mxu0 }
  0xb7   : > { %v418_v18 = vadd.f32 %v417_v14, %v280_v7 }
  0xb8   : > { %472 = vmatpush.msra.mxu1 %v462_v61  ;;  %v460_v9 = vmax.f32 %v433_v3, 0.0 }
  0xb9   : > { %v455_v23 = vmax.f32 %v418_v18, 0.0 }
  0xbd   : > { %v435_v2 = vpop.f32.mrf.mxu2 }
  0xbe   : > { %v436_v4 = vadd.f32 %v435_v2, %v310_v42 }
  0xc0   : > { %v461_v6 = vmax.f32 %v436_v4, 0.0 }
  0xc2   : > { %473 = vmatpush.msra.mxu1 %v461_v6 }
  0xc4   : > { %474 = vmatpush.msra.mxu1 %v460_v9 }
  0xc6   : > { %475 = vmatpush.msra.mxu1 %v459_v12 }
  0xc8   : > { %476 = vmatpush.msra.mxu1 %v458_v16 }
  0xca   : > { %477 = vmatpush.msra.mxu1 %v457_v17 }
  0xcc   : > { %478 = vmatpush.msra.mxu1 %v456_v19 }
  0xce   : > { %479 = vmatpush.msra.mxu1 %v455_v23 }
  0xd0   : > { %480 = vmatpush.msra.mxu1 %v454_v26 }
  0xd2   : > { %481 = vmatpush.msra.mxu1 %v453_v28 }
  0xd4   : > { %482 = vmatpush.msra.mxu1 %v452_v31 }
  0xd6   : > { %483 = vmatpush.msra.mxu1 %v451_v32 }
  0xd8   : > { %484 = vmatpush.msra.mxu1 %v450_v33 }
  0xd9   : > { %485 = vmatmul.f32.vlgmr.msra.gmra.mxu1 %v466_v35 }
 0x156   : > { %v486_v37 = vpop.f32.mrf.mxu1 }
 0x157   : > { %v487_v34 = vadd.f32 %v486_v37, %v468_v36 }
 0x159   : > { %489 = vst [vmem:[%s218_s23] sm:$0x1] %v487_v34 }
 0x15a PF: > { %s16_s20 = sadd.s32 1, %s582_s20  }
 0x15b   : > { %p13_p4 = scmp.ge.s32.totalorder %s16_s20, 4  }
 0x15d   :  { %15 = sbr.rel (!%p13_p4) target bundleno = 2 (0x2), region = 70 }

</bundles_post_ra>
